<compile_context>
chip_gen: v7x
topology: tpu7x:2x2x1
jax: 0.10.0
libtpu: 0.0.40
codegen_flags: <defaults>
</compile_context>

<pallas_src>
import functools
import math

import jax
import jax.numpy as jnp
from jax.experimental import pallas as pl
from jax.experimental.pallas import tpu as pltpu


_TAN_3PI_8 = 2.414213562373095   # tan(3*pi/8)
_TAN_PI_8 = 0.41421356237309503  # tan(pi/8)
_PI_2 = 1.5707963267948966
_PI_4 = 0.7853981633974483


def _atan(x):
    """float32 arctan (Cephes range reduction + degree-9 odd polynomial).

    Uses only abs/cmp/select/div/mul/add so it lowers on every TPU generation.
    """
    t = jnp.abs(x)
    big = t > _TAN_3PI_8
    mid = jnp.logical_and(t > _TAN_PI_8, jnp.logical_not(big))
    safe_t = jnp.maximum(t, jnp.float32(1e-30))       # keep the unused branch finite
    xr = jnp.where(big, -1.0 / safe_t, jnp.where(mid, (t - 1.0) / (t + 1.0), t))
    off = jnp.where(big, jnp.float32(_PI_2),
                    jnp.where(mid, jnp.float32(_PI_4), jnp.float32(0.0)))
    z = xr * xr
    poly = ((8.05374449538e-2 * z - 1.38776856032e-1) * z
            + 1.99777106478e-1) * z - 3.33329491539e-1
    r = off + xr + xr * z * poly
    return jnp.where(x < 0, -r, r)


def _grad_l1_kernel(pred_ref, gt_ref, mask_ref,
                    mag_out, ang_out, cnt_out,
                    prev_p, prev_g, prev_m,
                    *, h_total):
    t = pl.program_id(1)  # row-tile index (innermost, "arbitrary")

    @pl.when(t == 0)
    def _():
        mag_out[...] = jnp.zeros_like(mag_out)
        ang_out[...] = jnp.zeros_like(ang_out)
        cnt_out[...] = jnp.zeros_like(cnt_out)

    p = pred_ref[0]   # (TH, W) row tile of prediction
    g = gt_ref[0]     # (TH, W) row tile of target
    m = mask_ref[0]   # (TH, W) row tile of the 0/1 validity mask
    th, w = p.shape

    # Validity of each pixel as the "center" of the backward-difference
    # stencil: needs a west neighbor (col >= 1), a north neighbor
    # (global row >= 1) and must lie inside the image (ragged last tile).
    row = jax.lax.broadcasted_iota(jnp.int32, (th, w), 0)
    col = jax.lax.broadcasted_iota(jnp.int32, (th, w), 1)
    g_row = row + t * th
    in_bounds = jnp.logical_and(jnp.logical_and(g_row >= 1, g_row < h_total),
                                col >= 1)
    is_row0 = row == 0

    def west(x):
        # x shifted one column right (column 0 is wrapped junk, masked off).
        return pltpu.roll(x, shift=1, axis=1)

    def north(x, carry_ref):
        # x shifted one row down; tile-row 0 takes the carry (last row of the
        # previous row-tile of the same image).  At t == 0 the carry is stale
        # but global row 0 never produces loss terms, so it is masked away.
        rolled = pltpu.roll(x, shift=1, axis=0)
        return jnp.where(is_row0, carry_ref[...], rolled)

    p_w, p_n = west(p), north(p, prev_p)
    g_w, g_n = west(g), north(g, prev_g)
    m_w, m_n = west(m), north(m, prev_m)

    dxp, dyp = p - p_w, p - p_n
    dxg, dyg = g - g_w, g - g_n
    mag_p = dxp * dxp + dyp * dyp
    mag_g = dxg * dxg + dyg * dyg
    ang_p = _atan(dyp / (dxp + 1e-10))
    ang_g = _atan(dyg / (dxg + 1e-10))

    mk = jnp.logical_and(in_bounds, m > 0.5)
    mk = jnp.logical_and(mk, m_w > 0.5)
    mk = jnp.logical_and(mk, m_n > 0.5)

    zeros = jnp.zeros_like(p)
    mag_term = jnp.where(mk, jnp.abs(mag_p - mag_g), zeros)
    ang_term = jnp.where(mk, jnp.abs(ang_p - ang_g), zeros)
    cnt_term = jnp.where(mk, jnp.ones_like(p), zeros)

    # Sublane-only partial reduction; the wrapper finishes with jnp.sum.
    mag_out[...] += jnp.sum(mag_term, axis=0, keepdims=True)[None]
    ang_out[...] += jnp.sum(ang_term, axis=0, keepdims=True)[None]
    cnt_out[...] += jnp.sum(cnt_term, axis=0, keepdims=True)[None]

    # Carry the last row of this tile into the next row-tile of the same image.
    prev_p[...] = p[th - 1:th, :]
    prev_g[...] = g[th - 1:th, :]
    prev_m[...] = m[th - 1:th, :]


def _choose_row_tile(h, w):
    """Largest row tile whose 3 double-buffered f32 blocks fit ~8 MiB."""
    budget = 8 * 1024 * 1024
    per_row = 3 * 2 * w * 4
    max_th = max(8, budget // per_row)
    if h <= max_th:
        return h                      # whole image per step (block == full dims)
    th = (max_th // 8) * 8
    for cand in range(th, 7, -8):     # prefer a divisor of H (no ragged tail)
        if h % cand == 0:
            return cand
    return th                         # ragged tail handled by in-kernel masking


def _resize_bilinear_align_corners(x, out_h, out_w):
    """torch.nn.functional.interpolate(mode='bilinear', align_corners=True).

    Plain-JAX preprocessing, only used when input/target widths differ.
    """
    h, w = x.shape[-2], x.shape[-1]
    if (h, w) == (out_h, out_w):
        return x

    def src(n_in, n_out):
        if n_out == 1:
            return jnp.zeros((1,), jnp.float32)
        return jnp.arange(n_out, dtype=jnp.float32) * ((n_in - 1) / (n_out - 1))

    ys, xs = src(h, out_h), src(w, out_w)
    y0 = jnp.floor(ys).astype(jnp.int32)
    x0 = jnp.floor(xs).astype(jnp.int32)
    y1 = jnp.minimum(y0 + 1, h - 1)
    x1 = jnp.minimum(x0 + 1, w - 1)
    wy = (ys - y0.astype(jnp.float32))[:, None]
    wx = (xs - x0.astype(jnp.float32))[None, :]

    rows0 = jnp.take(x, y0, axis=-2)
    rows1 = jnp.take(x, y1, axis=-2)
    top = jnp.take(rows0, x0, axis=-1) * (1.0 - wx) + jnp.take(rows0, x1, axis=-1) * wx
    bot = jnp.take(rows1, x0, axis=-1) * (1.0 - wx) + jnp.take(rows1, x1, axis=-1) * wx
    return top * (1.0 - wy) + bot * wy


def grad_l1_loss(input, target, mask=None, interpolate=True,
                 return_interpolated=False):
    """GradL1Loss.forward: pred/target (..., H, W), mask broadcastable to them."""
    input = jnp.asarray(input, jnp.float32)
    target = jnp.asarray(target, jnp.float32)

    if input.shape[-1] != target.shape[-1] and interpolate:
        input = _resize_bilinear_align_corners(input, target.shape[-2],
                                               target.shape[-1])
    intr_input = input

    assert input.shape == target.shape, (input.shape, target.shape)
    H, W = target.shape[-2], target.shape[-1]
    assert H >= 2 and W >= 2, "gradient loss needs at least a 2x2 image"

    if mask is None:
        mask = jnp.ones(target.shape, dtype=bool)
    # Mask is cast to f32 once so the kernel sticks to plain f32 vector loads.
    maskf = jnp.broadcast_to(jnp.asarray(mask), target.shape).astype(jnp.float32)

    lead = target.shape[:-2]
    N = int(math.prod(lead)) if lead else 1
    p = input.reshape(N, H, W)
    g = target.reshape(N, H, W)
    m = maskf.reshape(N, H, W)

    TH = _choose_row_tile(H, W)
    T = pl.cdiv(H, TH)

    in_specs = [pl.BlockSpec((1, TH, W), lambda n, t: (n, t, 0)) for _ in range(3)]
    out_specs = [pl.BlockSpec((1, 1, W), lambda n, t: (n, 0, 0)) for _ in range(3)]
    out_shape = tuple(jax.ShapeDtypeStruct((N, 1, W), jnp.float32)
                      for _ in range(3))

    part_mag, part_ang, part_cnt = pl.pallas_call(
        functools.partial(_grad_l1_kernel, h_total=H),
        out_shape=out_shape,
        grid_spec=pltpu.PrefetchScalarGridSpec(
            num_scalar_prefetch=0,
            grid=(N, T),
            in_specs=in_specs,
            out_specs=out_specs,
            scratch_shapes=[
                pltpu.VMEM((1, W), jnp.float32),   # carry: pred last row
                pltpu.VMEM((1, W), jnp.float32),   # carry: gt last row
                pltpu.VMEM((1, W), jnp.float32),   # carry: mask last row
            ],
        ),
        compiler_params=pltpu.CompilerParams(
            dimension_semantics=("parallel", "arbitrary")),
    )(p, g, m)

    count = jnp.sum(part_cnt)
    loss = (jnp.sum(part_mag) + jnp.sum(part_ang)) / count
    if return_interpolated:
        return loss, intr_input
    return loss


def _reference_loss(input, target, mask):
    """Plain-JAX mirror of the PyTorch module (for validation)."""
    input = jnp.asarray(input, jnp.float32)
    target = jnp.asarray(target, jnp.float32)

    def grad(x):
        diff_x = x[..., 1:, 1:] - x[..., 1:, :-1]
        diff_y = x[..., 1:, 1:] - x[..., :-1, 1:]
        return diff_x ** 2 + diff_y ** 2, jnp.arctan(diff_y / (diff_x + 1e-10))

    mag_p, ang_p = grad(input)
    mag_g, ang_g = grad(target)
    mg = mask[..., 1:, 1:] & mask[..., 1:, :-1] & mask[..., :-1, 1:]
    cnt = jnp.sum(mg)
    l_mag = jnp.sum(jnp.where(mg, jnp.abs(mag_p - mag_g), 0.0)) / cnt
    l_ang = jnp.sum(jnp.where(mg, jnp.abs(ang_p - ang_g), 0.0)) / cnt
    return l_mag + l_ang


if __name__ == "__main__":
    key = jax.random.PRNGKey(0)
    k1, k2, k3 = jax.random.split(key, 3)
    B, C, H, W = 2, 4, 16, 16
    pred = jax.random.uniform(k1, (B, C, H, W), dtype=jnp.float32)
    gt = jax.random.uniform(k2, (B, C, H, W), dtype=jnp.float32)
    mask = jax.random.uniform(k3, (B, C, H, W), dtype=jnp.float32) > 0.2

    loss = grad_l1_loss(pred, gt, mask)
    jax.block_until_ready(loss)

    ref = _reference_loss(pred, gt, mask)
    assert bool(jnp.isfinite(loss)), loss
    assert jnp.allclose(loss, ref, rtol=1e-4, atol=1e-5), (loss, ref)
    print("KERNEL_OK")
</pallas_src>

<mosaic_0001>
module attributes {stable_mosaic.version = 11 : i64} {
  func.func @_grad_l1_kernel(%arg0: i32, %arg1: i32, %arg2: memref<1x16x16xf32, #tpu.memory_space<vmem>>, %arg3: memref<1x16x16xf32, #tpu.memory_space<vmem>>, %arg4: memref<1x16x16xf32, #tpu.memory_space<vmem>>, %arg5: memref<1x1x16xf32, #tpu.memory_space<vmem>>, %arg6: memref<1x1x16xf32, #tpu.memory_space<vmem>>, %arg7: memref<1x1x16xf32, #tpu.memory_space<vmem>>, %arg8: memref<1x16xf32, #tpu.memory_space<vmem>>, %arg9: memref<1x16xf32, #tpu.memory_space<vmem>>, %arg10: memref<1x16xf32, #tpu.memory_space<vmem>>) attributes {dimension_semantics = [#tpu.dimension_semantics<parallel>, #tpu.dimension_semantics<arbitrary>], iteration_bounds = array<i64: 8, 1>, scalar_prefetch = 0 : i64, scratch_operands = 3 : i64, tpu.core_type = #tpu.core_type<tc>, window_params = [{transform_indices = @transform_0, window_bounds = array<i64: 1, 16, 16>}, {transform_indices = @transform_1, window_bounds = array<i64: 1, 16, 16>}, {transform_indices = @transform_2, window_bounds = array<i64: 1, 16, 16>}, {transform_indices = @transform_3, window_bounds = array<i64: 1, 1, 16>}, {transform_indices = @transform_4, window_bounds = array<i64: 1, 1, 16>}, {transform_indices = @transform_5, window_bounds = array<i64: 1, 1, 16>}]} {
    %c0_i32 = arith.constant 0 : i32
    %0 = arith.cmpi eq, %arg1, %c0_i32 : i32
    %1 = arith.extui %0 : i1 to i32
    %c0_i32_0 = arith.constant 0 : i32
    %2 = arith.cmpi ne, %1, %c0_i32_0 : i32
    scf.if %2 {
      %cst_89 = arith.constant 0.000000e+00 : f32
      %186 = vector.broadcast %cst_89 : f32 to vector<1x1x16xf32>
      %c0_90 = arith.constant 0 : index
      %c0_91 = arith.constant 0 : index
      %c0_92 = arith.constant 0 : index
      %187 = vector.load %arg5[%c0_90, %c0_91, %c0_92] : memref<1x1x16xf32, #tpu.memory_space<vmem>>, vector<1x1x16xf32>
      tpu.vector_store %arg5[%c0_90, %c0_91, %c0_92], %186 {strides = array<i32>} : memref<1x1x16xf32, #tpu.memory_space<vmem>>, vector<1x1x16xf32>,
      %cst_93 = arith.constant 0.000000e+00 : f32
      %188 = vector.broadcast %cst_93 : f32 to vector<1x1x16xf32>
      %c0_94 = arith.constant 0 : index
      %c0_95 = arith.constant 0 : index
      %c0_96 = arith.constant 0 : index
      %189 = vector.load %arg6[%c0_94, %c0_95, %c0_96] : memref<1x1x16xf32, #tpu.memory_space<vmem>>, vector<1x1x16xf32>
      tpu.vector_store %arg6[%c0_94, %c0_95, %c0_96], %188 {strides = array<i32>} : memref<1x1x16xf32, #tpu.memory_space<vmem>>, vector<1x1x16xf32>,
      %cst_97 = arith.constant 0.000000e+00 : f32
      %190 = vector.broadcast %cst_97 : f32 to vector<1x1x16xf32>
      %c0_98 = arith.constant 0 : index
      %c0_99 = arith.constant 0 : index
      %c0_100 = arith.constant 0 : index
      %191 = vector.load %arg7[%c0_98, %c0_99, %c0_100] : memref<1x1x16xf32, #tpu.memory_space<vmem>>, vector<1x1x16xf32>
      tpu.vector_store %arg7[%c0_98, %c0_99, %c0_100], %190 {strides = array<i32>} : memref<1x1x16xf32, #tpu.memory_space<vmem>>, vector<1x1x16xf32>,
    } else {
    }
    %c0 = arith.constant 0 : index
    %c0_1 = arith.constant 0 : index
    %c0_2 = arith.constant 0 : index
    %3 = vector.load %arg2[%c0, %c0_1, %c0_2] : memref<1x16x16xf32, #tpu.memory_space<vmem>>, vector<1x16x16xf32>
    %4 = vector.shape_cast %3 : vector<1x16x16xf32> to vector<16x16xf32>
    %c0_3 = arith.constant 0 : index
    %c0_4 = arith.constant 0 : index
    %c0_5 = arith.constant 0 : index
    %5 = vector.load %arg3[%c0_3, %c0_4, %c0_5] : memref<1x16x16xf32, #tpu.memory_space<vmem>>, vector<1x16x16xf32>
    %6 = vector.shape_cast %5 : vector<1x16x16xf32> to vector<16x16xf32>
    %c0_6 = arith.constant 0 : index
    %c0_7 = arith.constant 0 : index
    %c0_8 = arith.constant 0 : index
    %7 = vector.load %arg4[%c0_6, %c0_7, %c0_8] : memref<1x16x16xf32, #tpu.memory_space<vmem>>, vector<1x16x16xf32>
    %8 = vector.shape_cast %7 : vector<1x16x16xf32> to vector<16x16xf32>
    %9 = tpu.iota {dimensions = array<i32: 0>} : vector<16x16xi32>
    %10 = tpu.iota {dimensions = array<i32: 1>} : vector<16x16xi32>
    %c16_i32 = arith.constant 16 : i32
    %11 = arith.muli %arg1, %c16_i32 : i32
    %12 = vector.broadcast %11 : i32 to vector<16x16xi32>
    %13 = arith.addi %9, %12 : vector<16x16xi32>
    %c1_i32 = arith.constant 1 : i32
    %14 = vector.broadcast %c1_i32 : i32 to vector<16x16xi32>
    %15 = arith.cmpi sge, %13, %14 : vector<16x16xi32>
    %c16_i32_9 = arith.constant 16 : i32
    %16 = vector.broadcast %c16_i32_9 : i32 to vector<16x16xi32>
    %17 = arith.cmpi slt, %13, %16 : vector<16x16xi32>
    %18 = arith.andi %15, %17 : vector<16x16xi1>
    %c1_i32_10 = arith.constant 1 : i32
    %19 = vector.broadcast %c1_i32_10 : i32 to vector<16x16xi32>
    %20 = arith.cmpi sge, %10, %19 : vector<16x16xi32>
    %21 = arith.andi %18, %20 : vector<16x16xi1>
    %c0_i32_11 = arith.constant 0 : i32
    %22 = vector.broadcast %c0_i32_11 : i32 to vector<16x16xi32>
    %23 = arith.cmpi eq, %9, %22 : vector<16x16xi32>
    %c1_i32_12 = arith.constant 1 : i32
    %24 = tpu.dynamic_rotate %4 by %c1_i32_12 dim 1 : vector<16x16xf32>, i32 -> vector<16x16xf32>
    %c1_i32_13 = arith.constant 1 : i32
    %25 = tpu.dynamic_rotate %4 by %c1_i32_13 dim 0 : vector<16x16xf32>, i32 -> vector<16x16xf32>
    %c0_14 = arith.constant 0 : index
    %c0_15 = arith.constant 0 : index
    %26 = vector.load %arg8[%c0_14, %c0_15] : memref<1x16xf32, #tpu.memory_space<vmem>>, vector<1x16xf32>
    %27 = vector.shape_cast %26 : vector<1x16xf32> to vector<1x16xf32>
    %28 = vector.broadcast %27 : vector<1x16xf32> to vector<16x16xf32>
    %29 = arith.select %23, %28, %25 : vector<16x16xi1>, vector<16x16xf32>
    %c1_i32_16 = arith.constant 1 : i32
    %30 = tpu.dynamic_rotate %6 by %c1_i32_16 dim 1 : vector<16x16xf32>, i32 -> vector<16x16xf32>
    %c1_i32_17 = arith.constant 1 : i32
    %31 = tpu.dynamic_rotate %6 by %c1_i32_17 dim 0 : vector<16x16xf32>, i32 -> vector<16x16xf32>
    %c0_18 = arith.constant 0 : index
    %c0_19 = arith.constant 0 : index
    %32 = vector.load %arg9[%c0_18, %c0_19] : memref<1x16xf32, #tpu.memory_space<vmem>>, vector<1x16xf32>
    %33 = vector.shape_cast %32 : vector<1x16xf32> to vector<1x16xf32>
    %34 = vector.broadcast %33 : vector<1x16xf32> to vector<16x16xf32>
    %35 = arith.select %23, %34, %31 : vector<16x16xi1>, vector<16x16xf32>
    %c1_i32_20 = arith.constant 1 : i32
    %36 = tpu.dynamic_rotate %8 by %c1_i32_20 dim 1 : vector<16x16xf32>, i32 -> vector<16x16xf32>
    %c1_i32_21 = arith.constant 1 : i32
    %37 = tpu.dynamic_rotate %8 by %c1_i32_21 dim 0 : vector<16x16xf32>, i32 -> vector<16x16xf32>
    %c0_22 = arith.constant 0 : index
    %c0_23 = arith.constant 0 : index
    %38 = vector.load %arg10[%c0_22, %c0_23] : memref<1x16xf32, #tpu.memory_space<vmem>>, vector<1x16xf32>
    %39 = vector.shape_cast %38 : vector<1x16xf32> to vector<1x16xf32>
    %40 = vector.broadcast %39 : vector<1x16xf32> to vector<16x16xf32>
    %41 = arith.select %23, %40, %37 : vector<16x16xi1>, vector<16x16xf32>
    %42 = arith.subf %4, %24 : vector<16x16xf32>
    %43 = arith.subf %4, %29 : vector<16x16xf32>
    %44 = arith.subf %6, %30 : vector<16x16xf32>
    %45 = arith.subf %6, %35 : vector<16x16xf32>
    %46 = arith.mulf %42, %42 : vector<16x16xf32>
    %47 = arith.mulf %43, %43 : vector<16x16xf32>
    %48 = arith.addf %46, %47 : vector<16x16xf32>
    %49 = arith.mulf %44, %44 : vector<16x16xf32>
    %50 = arith.mulf %45, %45 : vector<16x16xf32>
    %51 = arith.addf %49, %50 : vector<16x16xf32>
    %cst = arith.constant 1.000000e-10 : f32
    %52 = vector.broadcast %cst : f32 to vector<16x16xf32>
    %53 = arith.addf %42, %52 : vector<16x16xf32>
    %54 = arith.divf %43, %53 : vector<16x16xf32>
    %55 = math.absf %54 : vector<16x16xf32>
    %cst_24 = arith.constant 2.41421366 : f32
    %56 = vector.broadcast %cst_24 : f32 to vector<16x16xf32>
    %57 = arith.cmpf ogt, %55, %56 : vector<16x16xf32>
    %cst_25 = arith.constant 0.414213568 : f32
    %58 = vector.broadcast %cst_25 : f32 to vector<16x16xf32>
    %59 = arith.cmpf ogt, %55, %58 : vector<16x16xf32>
    %cst_26 = arith.constant dense<true> : vector<16x16xi1>
    %60 = arith.xori %57, %cst_26 : vector<16x16xi1>
    %61 = arith.andi %59, %60 : vector<16x16xi1>
    %cst_27 = arith.constant 1.000000e-30 : f32
    %62 = vector.broadcast %cst_27 : f32 to vector<16x16xf32>
    %63 = arith.maximumf %55, %62 : vector<16x16xf32>
    %cst_28 = arith.constant -1.000000e+00 : f32
    %64 = vector.broadcast %cst_28 : f32 to vector<16x16xf32>
    %65 = arith.divf %64, %63 : vector<16x16xf32>
    %cst_29 = arith.constant 1.000000e+00 : f32
    %66 = vector.broadcast %cst_29 : f32 to vector<16x16xf32>
    %67 = arith.subf %55, %66 : vector<16x16xf32>
    %cst_30 = arith.constant 1.000000e+00 : f32
    %68 = vector.broadcast %cst_30 : f32 to vector<16x16xf32>
    %69 = arith.addf %55, %68 : vector<16x16xf32>
    %70 = arith.divf %67, %69 : vector<16x16xf32>
    %71 = arith.select %61, %70, %55 : vector<16x16xi1>, vector<16x16xf32>
    %72 = arith.select %57, %65, %71 : vector<16x16xi1>, vector<16x16xf32>
    %cst_31 = arith.constant 0.785398185 : f32
    %cst_32 = arith.constant 0.000000e+00 : f32
    %73 = vector.broadcast %cst_31 : f32 to vector<16x16xf32>
    %74 = vector.broadcast %cst_32 : f32 to vector<16x16xf32>
    %75 = arith.select %61, %73, %74 : vector<16x16xi1>, vector<16x16xf32>
    %cst_33 = arith.constant 1.57079637 : f32
    %76 = vector.broadcast %cst_33 : f32 to vector<16x16xf32>
    %77 = arith.select %57, %76, %75 : vector<16x16xi1>, vector<16x16xf32>
    %78 = arith.mulf %72, %72 : vector<16x16xf32>
    %cst_34 = arith.constant 0.0805374458 : f32
    %79 = vector.broadcast %cst_34 : f32 to vector<16x16xf32>
    %80 = arith.mulf %79, %78 : vector<16x16xf32>
    %cst_35 = arith.constant 0.138776854 : f32
    %81 = vector.broadcast %cst_35 : f32 to vector<16x16xf32>
    %82 = arith.subf %80, %81 : vector<16x16xf32>
    %83 = arith.mulf %82, %78 : vector<16x16xf32>
    %cst_36 = arith.constant 0.199777111 : f32
    %84 = vector.broadcast %cst_36 : f32 to vector<16x16xf32>
    %85 = arith.addf %83, %84 : vector<16x16xf32>
    %86 = arith.mulf %85, %78 : vector<16x16xf32>
    %cst_37 = arith.constant 0.333329499 : f32
    %87 = vector.broadcast %cst_37 : f32 to vector<16x16xf32>
    %88 = arith.subf %86, %87 : vector<16x16xf32>
    %89 = arith.addf %77, %72 : vector<16x16xf32>
    %90 = arith.mulf %72, %78 : vector<16x16xf32>
    %91 = arith.mulf %90, %88 : vector<16x16xf32>
    %92 = arith.addf %89, %91 : vector<16x16xf32>
    %cst_38 = arith.constant 0.000000e+00 : f32
    %93 = vector.broadcast %cst_38 : f32 to vector<16x16xf32>
    %94 = arith.cmpf olt, %54, %93 : vector<16x16xf32>
    %cst_39 = arith.constant 0.000000e+00 : f32
    %95 = vector.broadcast %cst_39 : f32 to vector<16x16xf32>
    %96 = arith.subf %95, %92 : vector<16x16xf32>
    %97 = arith.select %94, %96, %92 : vector<16x16xi1>, vector<16x16xf32>
    %cst_40 = arith.constant 1.000000e-10 : f32
    %98 = vector.broadcast %cst_40 : f32 to vector<16x16xf32>
    %99 = arith.addf %44, %98 : vector<16x16xf32>
    %100 = arith.divf %45, %99 : vector<16x16xf32>
    %101 = math.absf %100 : vector<16x16xf32>
    %cst_41 = arith.constant 2.41421366 : f32
    %102 = vector.broadcast %cst_41 : f32 to vector<16x16xf32>
    %103 = arith.cmpf ogt, %101, %102 : vector<16x16xf32>
    %cst_42 = arith.constant 0.414213568 : f32
    %104 = vector.broadcast %cst_42 : f32 to vector<16x16xf32>
    %105 = arith.cmpf ogt, %101, %104 : vector<16x16xf32>
    %cst_43 = arith.constant dense<true> : vector<16x16xi1>
    %106 = arith.xori %103, %cst_43 : vector<16x16xi1>
    %107 = arith.andi %105, %106 : vector<16x16xi1>
    %cst_44 = arith.constant 1.000000e-30 : f32
    %108 = vector.broadcast %cst_44 : f32 to vector<16x16xf32>
    %109 = arith.maximumf %101, %108 : vector<16x16xf32>
    %cst_45 = arith.constant -1.000000e+00 : f32
    %110 = vector.broadcast %cst_45 : f32 to vector<16x16xf32>
    %111 = arith.divf %110, %109 : vector<16x16xf32>
    %cst_46 = arith.constant 1.000000e+00 : f32
    %112 = vector.broadcast %cst_46 : f32 to vector<16x16xf32>
    %113 = arith.subf %101, %112 : vector<16x16xf32>
    %cst_47 = arith.constant 1.000000e+00 : f32
    %114 = vector.broadcast %cst_47 : f32 to vector<16x16xf32>
    %115 = arith.addf %101, %114 : vector<16x16xf32>
    %116 = arith.divf %113, %115 : vector<16x16xf32>
    %117 = arith.select %107, %116, %101 : vector<16x16xi1>, vector<16x16xf32>
    %118 = arith.select %103, %111, %117 : vector<16x16xi1>, vector<16x16xf32>
    %cst_48 = arith.constant 0.785398185 : f32
    %cst_49 = arith.constant 0.000000e+00 : f32
    %119 = vector.broadcast %cst_48 : f32 to vector<16x16xf32>
    %120 = vector.broadcast %cst_49 : f32 to vector<16x16xf32>
    %121 = arith.select %107, %119, %120 : vector<16x16xi1>, vector<16x16xf32>
    %cst_50 = arith.constant 1.57079637 : f32
    %122 = vector.broadcast %cst_50 : f32 to vector<16x16xf32>
    %123 = arith.select %103, %122, %121 : vector<16x16xi1>, vector<16x16xf32>
    %124 = arith.mulf %118, %118 : vector<16x16xf32>
    %cst_51 = arith.constant 0.0805374458 : f32
    %125 = vector.broadcast %cst_51 : f32 to vector<16x16xf32>
    %126 = arith.mulf %125, %124 : vector<16x16xf32>
    %cst_52 = arith.constant 0.138776854 : f32
    %127 = vector.broadcast %cst_52 : f32 to vector<16x16xf32>
    %128 = arith.subf %126, %127 : vector<16x16xf32>
    %129 = arith.mulf %128, %124 : vector<16x16xf32>
    %cst_53 = arith.constant 0.199777111 : f32
    %130 = vector.broadcast %cst_53 : f32 to vector<16x16xf32>
    %131 = arith.addf %129, %130 : vector<16x16xf32>
    %132 = arith.mulf %131, %124 : vector<16x16xf32>
    %cst_54 = arith.constant 0.333329499 : f32
    %133 = vector.broadcast %cst_54 : f32 to vector<16x16xf32>
    %134 = arith.subf %132, %133 : vector<16x16xf32>
    %135 = arith.addf %123, %118 : vector<16x16xf32>
    %136 = arith.mulf %118, %124 : vector<16x16xf32>
    %137 = arith.mulf %136, %134 : vector<16x16xf32>
    %138 = arith.addf %135, %137 : vector<16x16xf32>
    %cst_55 = arith.constant 0.000000e+00 : f32
    %139 = vector.broadcast %cst_55 : f32 to vector<16x16xf32>
    %140 = arith.cmpf olt, %100, %139 : vector<16x16xf32>
    %cst_56 = arith.constant 0.000000e+00 : f32
    %141 = vector.broadcast %cst_56 : f32 to vector<16x16xf32>
    %142 = arith.subf %141, %138 : vector<16x16xf32>
    %143 = arith.select %140, %142, %138 : vector<16x16xi1>, vector<16x16xf32>
    %cst_57 = arith.constant 5.000000e-01 : f32
    %144 = vector.broadcast %cst_57 : f32 to vector<16x16xf32>
    %145 = arith.cmpf ogt, %8, %144 : vector<16x16xf32>
    %146 = arith.andi %21, %145 : vector<16x16xi1>
    %cst_58 = arith.constant 5.000000e-01 : f32
    %147 = vector.broadcast %cst_58 : f32 to vector<16x16xf32>
    %148 = arith.cmpf ogt, %36, %147 : vector<16x16xf32>
    %149 = arith.andi %146, %148 : vector<16x16xi1>
    %cst_59 = arith.constant 5.000000e-01 : f32
    %150 = vector.broadcast %cst_59 : f32 to vector<16x16xf32>
    %151 = arith.cmpf ogt, %41, %150 : vector<16x16xf32>
    %152 = arith.andi %149, %151 : vector<16x16xi1>
    %cst_60 = arith.constant 0.000000e+00 : f32
    %153 = vector.broadcast %cst_60 : f32 to vector<16x16xf32>
    %154 = arith.subf %48, %51 : vector<16x16xf32>
    %155 = math.absf %154 : vector<16x16xf32>
    %156 = arith.select %152, %155, %153 : vector<16x16xi1>, vector<16x16xf32>
    %157 = arith.subf %97, %143 : vector<16x16xf32>
    %158 = math.absf %157 : vector<16x16xf32>
    %159 = arith.select %152, %158, %153 : vector<16x16xi1>, vector<16x16xf32>
    %cst_61 = arith.constant 1.000000e+00 : f32
    %160 = vector.broadcast %cst_61 : f32 to vector<16x16xf32>
    %161 = arith.select %152, %160, %153 : vector<16x16xi1>, vector<16x16xf32>
    %c0_62 = arith.constant 0 : index
    %c0_63 = arith.constant 0 : index
    %c0_64 = arith.constant 0 : index
    %162 = vector.load %arg5[%c0_62, %c0_63, %c0_64] : memref<1x1x16xf32, #tpu.memory_space<vmem>>, vector<1x1x16xf32>
    %cst_65 = arith.constant dense<0.000000e+00> : vector<16xf32>
    %163 = vector.multi_reduction <add>, %156, %cst_65 [0] : vector<16x16xf32> to vector<16xf32>
    %164 = vector.shape_cast %163 : vector<16xf32> to vector<1x16xf32>
    %165 = vector.shape_cast %164 : vector<1x16xf32> to vector<1x1x16xf32>
    %166 = arith.addf %162, %165 : vector<1x1x16xf32>
    %c0_66 = arith.constant 0 : index
    %c0_67 = arith.constant 0 : index
    %c0_68 = arith.constant 0 : index
    %167 = vector.load %arg5[%c0_66, %c0_67, %c0_68] : memref<1x1x16xf32, #tpu.memory_space<vmem>>, vector<1x1x16xf32>
    tpu.vector_store %arg5[%c0_66, %c0_67, %c0_68], %166 {strides = array<i32>} : memref<1x1x16xf32, #tpu.memory_space<vmem>>, vector<1x1x16xf32>,
    %c0_69 = arith.constant 0 : index
    %c0_70 = arith.constant 0 : index
    %c0_71 = arith.constant 0 : index
    %168 = vector.load %arg6[%c0_69, %c0_70, %c0_71] : memref<1x1x16xf32, #tpu.memory_space<vmem>>, vector<1x1x16xf32>
    %cst_72 = arith.constant dense<0.000000e+00> : vector<16xf32>
    %169 = vector.multi_reduction <add>, %159, %cst_72 [0] : vector<16x16xf32> to vector<16xf32>
    %170 = vector.shape_cast %169 : vector<16xf32> to vector<1x16xf32>
    %171 = vector.shape_cast %170 : vector<1x16xf32> to vector<1x1x16xf32>
    %172 = arith.addf %168, %171 : vector<1x1x16xf32>
    %c0_73 = arith.constant 0 : index
    %c0_74 = arith.constant 0 : index
    %c0_75 = arith.constant 0 : index
    %173 = vector.load %arg6[%c0_73, %c0_74, %c0_75] : memref<1x1x16xf32, #tpu.memory_space<vmem>>, vector<1x1x16xf32>
    tpu.vector_store %arg6[%c0_73, %c0_74, %c0_75], %172 {strides = array<i32>} : memref<1x1x16xf32, #tpu.memory_space<vmem>>, vector<1x1x16xf32>,
    %c0_76 = arith.constant 0 : index
    %c0_77 = arith.constant 0 : index
    %c0_78 = arith.constant 0 : index
    %174 = vector.load %arg7[%c0_76, %c0_77, %c0_78] : memref<1x1x16xf32, #tpu.memory_space<vmem>>, vector<1x1x16xf32>
    %cst_79 = arith.constant dense<0.000000e+00> : vector<16xf32>
    %175 = vector.multi_reduction <add>, %161, %cst_79 [0] : vector<16x16xf32> to vector<16xf32>
    %176 = vector.shape_cast %175 : vector<16xf32> to vector<1x16xf32>
    %177 = vector.shape_cast %176 : vector<1x16xf32> to vector<1x1x16xf32>
    %178 = arith.addf %174, %177 : vector<1x1x16xf32>
    %c0_80 = arith.constant 0 : index
    %c0_81 = arith.constant 0 : index
    %c0_82 = arith.constant 0 : index
    %179 = vector.load %arg7[%c0_80, %c0_81, %c0_82] : memref<1x1x16xf32, #tpu.memory_space<vmem>>, vector<1x1x16xf32>
    tpu.vector_store %arg7[%c0_80, %c0_81, %c0_82], %178 {strides = array<i32>} : memref<1x1x16xf32, #tpu.memory_space<vmem>>, vector<1x1x16xf32>,
    %180 = vector.extract_strided_slice %4 {offsets = [15, 0], sizes = [1, 16], strides = [1, 1]} : vector<16x16xf32> to vector<1x16xf32>
    %c0_83 = arith.constant 0 : index
    %c0_84 = arith.constant 0 : index
    %181 = vector.load %arg8[%c0_83, %c0_84] : memref<1x16xf32, #tpu.memory_space<vmem>>, vector<1x16xf32>
    tpu.vector_store %arg8[%c0_83, %c0_84], %180 {strides = array<i32>} : memref<1x16xf32, #tpu.memory_space<vmem>>, vector<1x16xf32>,
    %182 = vector.extract_strided_slice %6 {offsets = [15, 0], sizes = [1, 16], strides = [1, 1]} : vector<16x16xf32> to vector<1x16xf32>
    %c0_85 = arith.constant 0 : index
    %c0_86 = arith.constant 0 : index
    %183 = vector.load %arg9[%c0_85, %c0_86] : memref<1x16xf32, #tpu.memory_space<vmem>>, vector<1x16xf32>
    tpu.vector_store %arg9[%c0_85, %c0_86], %182 {strides = array<i32>} : memref<1x16xf32, #tpu.memory_space<vmem>>, vector<1x16xf32>,
    %184 = vector.extract_strided_slice %8 {offsets = [15, 0], sizes = [1, 16], strides = [1, 1]} : vector<16x16xf32> to vector<1x16xf32>
    %c0_87 = arith.constant 0 : index
    %c0_88 = arith.constant 0 : index
    %185 = vector.load %arg10[%c0_87, %c0_88] : memref<1x16xf32, #tpu.memory_space<vmem>>, vector<1x16xf32>
    tpu.vector_store %arg10[%c0_87, %c0_88], %184 {strides = array<i32>} : memref<1x16xf32, #tpu.memory_space<vmem>>, vector<1x16xf32>,
    return
  }
  func.func @transform_0(%arg0: i32, %arg1: i32) -> (i32, i32, i32) {
    %c0_i32 = arith.constant 0 : i32
    %c0_i32_0 = arith.constant 0 : i32
    return %arg0, %arg1, %c0_i32 : i32, i32, i32
  }
  func.func @transform_1(%arg0: i32, %arg1: i32) -> (i32, i32, i32) {
    %c0_i32 = arith.constant 0 : i32
    %c0_i32_0 = arith.constant 0 : i32
    return %arg0, %arg1, %c0_i32 : i32, i32, i32
  }
  func.func @transform_2(%arg0: i32, %arg1: i32) -> (i32, i32, i32) {
    %c0_i32 = arith.constant 0 : i32
    %c0_i32_0 = arith.constant 0 : i32
    return %arg0, %arg1, %c0_i32 : i32, i32, i32
  }
  func.func @transform_3(%arg0: i32, %arg1: i32) -> (i32, i32, i32) {
    %c0_i32 = arith.constant 0 : i32
    %c0_i32_0 = arith.constant 0 : i32
    %c0_i32_1 = arith.constant 0 : i32
    return %arg0, %c0_i32, %c0_i32_0 : i32, i32, i32
  }
  func.func @transform_4(%arg0: i32, %arg1: i32) -> (i32, i32, i32) {
    %c0_i32 = arith.constant 0 : i32
    %c0_i32_0 = arith.constant 0 : i32
    %c0_i32_1 = arith.constant 0 : i32
    return %arg0, %c0_i32, %c0_i32_0 : i32, i32, i32
  }
  func.func @transform_5(%arg0: i32, %arg1: i32) -> (i32, i32, i32) {
    %c0_i32 = arith.constant 0 : i32
    %c0_i32_0 = arith.constant 0 : i32
    %c0_i32_1 = arith.constant 0 : i32
    return %arg0, %c0_i32, %c0_i32_0 : i32, i32, i32
  }
}

</mosaic_0001>

<bundles_post_ra>
// kernel: tpu_custom_call.1
= control target key start
LH: loop header
LB: loop body
LE: loop exit
PB: predicated region body
PF: predicated region fallthrough
CT: control target
= control target key end

     0   :  { %s2036_s0 = inlined_call_operand.hbm [shape: f32[8,16,16], index: 0, kind: input, shape index: {}]   ;;  %s2037_s1 = inlined_call_operand.hbm [shape: f32[8,16,16], index: 1, kind: input, shape index: {}]   ;;  %s2038_s2 = inlined_call_operand.hbm [shape: f32[8,16,16], index: 2, kind: input, shape index: {}]   ;;  %s2039_s3 = inlined_call_operand.hbm [shape: f32[8,1,16], index: 3, kind: output, shape index: {0}]   ;;  %s2040_s4 = inlined_call_operand.hbm [shape: f32[8,1,16], index: 4, kind: output, shape index: {1}]   ;;  %s2041_s5 = inlined_call_operand.hbm [shape: f32[8,1,16], index: 5, kind: output, shape index: {2}]  }
   0x1   :  { %2055 = sst [smem:[#allocation24_spill]] %s2037_s1 }
   0x2   :  { %11 = vsyncpa [#allocation6], 0 }
   0x3   :  { %13 = vsyncpa [#allocation6 + $0x1], 0 }
   0x4   :  { %14 = vsyncpa [#allocation9], 0 }
   0x5   :  { %16 = vsyncpa [#allocation9 + $0x1], 0 }
   0x6   :  { %17 = vsyncpa [#allocation7], 0 }
   0x7   :  { %19 = vsyncpa [#allocation7 + $0x1], 0 }
   0x8   :  { %20 = vsyncpa [#allocation13], 0 }
   0x9   :  { %22 = vsyncpa [#allocation13 + $0x1], 0  ;;  %s1377_s18 = smov 0   ;;  %s1379_s19 = smov 0  }
   0xa   :  { %s1381_s20 = smov 0   ;;  %s1383_s21 = smov 0  }
   0xb   :  { %s1385_s22 = smov 0   ;;  %s1387_s23 = smov 0  }
   0xc LB: > { %2056 = sst [smem:[#allocation19_spill]] %s1312_s18  ;;  %s1408_s24 = sadd.s32 4294967295, %s1332_s23   ;;  %s1332_s23 = sphi %s1387_s23, %s28_s23   ;;  %s1328_s22 = sphi %s1385_s22, %s2101_s22   ;;  %s1324_s21 = sphi %s1383_s21, %s2100_s21   ;;  %s1320_s20 = sphi %s1381_s20, %s2104_s20   ;;  %s1316_s19 = sphi %s1379_s19, %s2103_s19   ;;  %s1312_s18 = sphi %s1377_s18, %s2102_s18  }
   0xd   : > { %2057 = sst [smem:[#allocation20_spill]] %s1328_s22  ;;  %s2042_s25 = sadd.s32 4294967294, %s1332_s23  }
   0xe   : > { %s40_s26 = sadd.s32 1, %s1328_s22  ;;  %s49_s27 = sadd.s32 1, %s1320_s20 }
   0xf   : > { %p42_p0 = scmp.ge.s32.totalorder %s40_s26, 8  ;;  %p56_p1 = scmp.ne.s32.totalorder %s1320_s20, %s1316_s19 }
  0x10   : > { %p57_p2 = scmp.eq.s32.totalorder %s1332_s23, 0  ;;  %p62_p3 = scmp.ne.s32.totalorder %s1316_s19, %s1312_s18 }
  0x11   : > { %s2106_s26 = smov (%p42_p0, %s40_s26), 0  ;;  %p63_p5 = scmp.eq.s32.totalorder %s1408_s24, 0 }
  0x12   : > { %2058 = sst [smem:[#allocation21_spill]] %s2106_s26  ;;  %p1420_p4 = por %p57_p2, %p56_p1 }
  0x13   : > { %s44_s29 = ssub.s32 %s1328_s22, %s2106_s26  ;;  %p142_p6 = scmp.eq.s32.totalorder %s1408_s24, 7 }
  0x14   : > { %p47_p7 = scmp.eq.s32.totalorder %s44_s29, 0  ;;  %p1428_p8 = por %p63_p5, %p62_p3 }
  0x15   : > { %p1432_p9 = por %p142_p6, %p56_p1  ;;  %p148_p10 = scmp.eq.s32.totalorder %s2042_s25, 7 }
  0x16   : > { %s2060_s30 = scalar_select %p1428_p8, 1, 0 }
  0x17   : > { %s2061_s6 = scalar_select %p1432_p9, 1, 0 }
  0x18   : > { %s1439_s7 = scalar_select %p47_p7, %s1320_s20, %s49_s27  }
  0x19   : > { %p1441_p11 = por %p148_p10, %p62_p3  ;;  %p1015_p12 = scmp.lt.s32.totalorder %s1332_s23, 8 }
  0x1a   : > { %2062 = sst [smem:[#allocation22_spill]] %s1439_s7  ;;  %s2043_s9 = sand.u32 1, %s1320_s20  }
  0x1b   : > { %s2063_s8 = scalar_select %p1441_p11, 1, 0 }
  0x1c   : > { %s1449_s10 = sshll.u32 %s2043_s9, 4  ;;  %s1452_s11 = sshll.u32 %s1328_s22, 8 }
  0x1d   : > { %2064 = sst [smem:[#allocation23_spill]] %s2063_s8  ;;  %p1456_p13 = pnand %p1015_p12, %p1420_p4 }
  0x1e   : > { %s243_s13 = sand.u32 1, %s1332_s23   ;;  %s2066_s1 = sld [smem:[#allocation24_spill]] }
  0x1f   : > { %s247_s17 = scalar_lea.vmem [#allocation8], %s1449_s10  ;;  %s1472_s28 = scalar_lea.sflag [#allocation9], %s243_s13 }
  0x20   : > { %s256_s27 = sshll.u32 %s247_s17, 4  ;;  %p1478_p3 = pneg %p1456_p13  ;;  %s1469_s27 = int_to_ptr.vmem [resolvable:$true] %s256_s27 }
  0x24   : > { %s1465_s16 = scalar_lea.hbm %s2066_s1, %s1452_s11  ;;  %s1101_s17 = scalar_lea.hbm %s2066_s1, 2048 }
  0x25   : > { %s1096_s29 = scalar_lea.hbm %s1465_s16, 256  ;;  %p1102_p6 = scmp.lt.u32.totalorder %s1465_s16, %s2066_s1 }
  0x26   : > { %p1097_p2 = scmp.ne.s32.totalorder %s1465_s16, %s1096_s29  ;;  %p1103_p7 = scmp.lt.u32.totalorder %s1101_s17, %s1096_s29 }
  0x27   : > { %p1105_p12 = scmp.lt.u32.totalorder %s1096_s29, %s1465_s16 }
  0x28   : > { %p1099_p4 = pnand %p1478_p3, %p1097_p2  ;;  %p1104_p10 = por %p1103_p7, %p1102_p6 }
  0x2a   : > { %p1100_p5 = pneg %p1099_p4  ;;  %p1106_p0 = por %p1105_p12, %p1104_p10 }
  0x2c   : > { %p1107_p1 = pnand %p1106_p0, %p1100_p5 }
  0x2e   : > { %1110 = shalt.err (!%p1107_p1)
}
  0x2f   : > { %s1111_s13 = scalar_lea.vmem %s1469_s27, 256  ;;  %s1334_s14 = smov [#allocation8]  }
  0x30   : > { %p1112_p2 = scmp.ne.s32.totalorder %s1469_s27, %s1111_s13  ;;  %s1116_s15 = sshll.u32 %s1334_s14, 4  ;;  %s1117_s15 = int_to_ptr.vmem [resolvable:$false] %s1116_s15 }
  0x31   : > { %s1118_s26 = scalar_lea.vmem %s1117_s15, 512  ;;  %p1119_p9 = scmp.lt.s32.totalorder %s1469_s27, %s1117_s15 }
  0x32   : > { %p1114_p4 = pnand %p1112_p2, %p1478_p3  ;;  %p1120_p8 = scmp.lt.s32.totalorder %s1118_s26, %s1111_s13 }
  0x34   : > { %p1115_p11 = pneg %p1114_p4  ;;  %p1121_p6 = por %p1120_p8, %p1119_p9 }
  0x36   : > { %p1122_p7 = pnand %p1121_p6, %p1115_p11 }
  0x38   : > { %1125 = shalt.err (!%p1122_p7)
}
  0x39   : > { %s2047_s9 = smov 128   ;;  %s2049_s29 = smov 8  }
  0x3a   : > { %1001 = dma.hbm_to_vmem [thread:$0]  (!%p1456_p13), %s1465_s16, 256, %s1469_s27, %s1472_s28, %s2047_s9, %s2047_s9, %s2049_s29  }
  0x3b   : > { %p2068_p8 = scmp.lt.s32.totalorder %s1332_s23, 9  ;;  %p2069_p9 = scmp.ge.s32.totalorder %s1332_s23, 1 }
  0x3c   : > { %s1517_s15 = scalar_lea.hbm %s2036_s0, %s1452_s11  ;;  %s224_s26 = scalar_lea.vmem [#allocation5], %s1449_s10 }
  0x3d   : > { %p1509_p11 = pnand %p2069_p9, %p2068_p8  ;;  %s233_s1 = sshll.u32 %s224_s26, 4  ;;  %s1520_s1 = int_to_ptr.vmem [resolvable:$true] %s233_s1 }
  0x3e   : > { %s1526_s9 = scalar_lea.hbm %s2038_s2, %s1452_s11  ;;  %s2071_s29 = sand.u32 1, %s1320_s20  }
  0x3f   : > { %s2070_s17 = scalar_select %p1509_p11, 1, 0 }
  0x40   : > { %s1530_s22 = scalar_lea.sflag [#allocation6], %s2071_s29  ;;  %s1126_s7 = scalar_lea.hbm %s1517_s15, 256 }
  0x41   : > { %p1127_p0 = scmp.ne.s32.totalorder %s1517_s15, %s1126_s7  ;;  %s1131_s8 = scalar_lea.hbm %s2036_s0, 2048 }
  0x42   : > { %p1132_p10 = scmp.lt.u32.totalorder %s1517_s15, %s2036_s0  ;;  %p1133_p12 = scmp.lt.u32.totalorder %s1131_s8, %s1126_s7 }
  0x43   : > { %p1129_p1 = pnand %p1127_p0, %p1478_p3  ;;  %p1135_p4 = scmp.lt.u32.totalorder %s1126_s7, %s1517_s15 }
  0x44   : > { %p1134_p2 = por %p1133_p12, %p1132_p10 }
  0x45   : > { %p1130_p5 = pneg %p1129_p1 }
  0x46   : > { %p1136_p6 = por %p1135_p4, %p1134_p2 }
  0x48   : > { %p1137_p7 = pnand %p1136_p6, %p1130_p5 }
  0x4a   : > { %1140 = shalt.err (!%p1137_p7)
}
  0x4b   : > { %s1141_s11 = scalar_lea.vmem %s1520_s1, 256  ;;  %s1337_s29 = smov [#allocation5]  }
  0x4c   : > { %p1142_p8 = scmp.ne.s32.totalorder %s1520_s1, %s1141_s11  ;;  %s1146_s16 = sshll.u32 %s1337_s29, 4  ;;  %s1147_s16 = int_to_ptr.vmem [resolvable:$false] %s1146_s16 }
  0x4d   : > { %s1148_s18 = scalar_lea.vmem %s1147_s16, 512  ;;  %p1149_p1 = scmp.lt.s32.totalorder %s1520_s1, %s1147_s16 }
  0x4e   : > { %p1144_p9 = pnand %p1142_p8, %p1478_p3  ;;  %p1150_p11 = scmp.lt.s32.totalorder %s1148_s18, %s1141_s11 }
  0x50   : > { %p1145_p0 = pneg %p1144_p9  ;;  %p1151_p10 = por %p1150_p11, %p1149_p1 }
  0x52   : > { %p1152_p12 = pnand %p1151_p10, %p1145_p0 }
  0x54   : > { %1155 = shalt.err (!%p1152_p12)
}
  0x55   : > { %s2072_s7 = smov 8   ;;  %s2073_s8 = smov 128  }
  0x56   : > { %998 = dma.hbm_to_vmem [thread:$0]  (!%p1456_p13), %s1517_s15, 256, %s1520_s1, %s1530_s22, %s2073_s8, %s2073_s8, %s2072_s7  }
  0x57   : > { %s270_s27 = scalar_lea.vmem [#allocation10], %s1449_s10  ;;  %s1156_s14 = scalar_lea.hbm %s1526_s9, 256 }
  0x58   : > { %s279_s13 = sshll.u32 %s270_s27, 4  ;;  %p1157_p11 = scmp.ne.s32.totalorder %s1526_s9, %s1156_s14  ;;  %s1558_s13 = int_to_ptr.vmem [resolvable:$true] %s279_s13 }
  0x59   : > { %s1161_s29 = scalar_lea.hbm %s2038_s2, 2048  ;;  %p1162_p4 = scmp.lt.u32.totalorder %s1526_s9, %s2038_s2 }
  0x5a   : > { %p1159_p5 = pnand %p1157_p11, %p1478_p3  ;;  %p1163_p6 = scmp.lt.u32.totalorder %s1161_s29, %s1156_s14 }
  0x5b   : > { %p1165_p8 = scmp.lt.u32.totalorder %s1156_s14, %s1526_s9 }
  0x5c   : > { %p1160_p2 = pneg %p1159_p5  ;;  %p1164_p7 = por %p1163_p6, %p1162_p4 }
  0x5e   : > { %p1166_p9 = por %p1165_p8, %p1164_p7 }
  0x60   : > { %p1167_p0 = pnand %p1166_p9, %p1160_p2 }
  0x62   : > { %1170 = shalt.err (!%p1167_p0)
}
  0x63   : > { %s1171_s1 = scalar_lea.vmem %s1558_s13, 256  ;;  %s1338_s22 = smov [#allocation10]  }
  0x64   : > { %p1172_p1 = scmp.ne.s32.totalorder %s1558_s13, %s1171_s1  ;;  %s1176_s10 = sshll.u32 %s1338_s22, 4  ;;  %s1177_s10 = int_to_ptr.vmem [resolvable:$false] %s1176_s10 }
  0x65   : > { %s1178_s15 = scalar_lea.vmem %s1177_s10, 512  ;;  %p1179_p11 = scmp.lt.s32.totalorder %s1558_s13, %s1177_s10 }
  0x66   : > { %p1174_p10 = pnand %p1172_p1, %p1478_p3  ;;  %p1180_p5 = scmp.lt.s32.totalorder %s1178_s15, %s1171_s1 }
  0x68   : > { %p1175_p12 = pneg %p1174_p10  ;;  %p1181_p4 = por %p1180_p5, %p1179_p11 }
  0x6a   : > { %p1182_p6 = pnand %p1181_p4, %p1175_p12 }
  0x6c   : > { %1185 = shalt.err (!%p1182_p6)
}
  0x6d   : > { %1004 = dma.hbm_to_vmem [thread:$0]  (!%p1456_p13), %s1526_s9, 256, %s1558_s13, %s1472_s28, %s2073_s8, %s2073_s8, %s2072_s7  }
  0x6e   : > { %p2074_p3 = scmp.ne.s32.totalorder %s2070_s17, 0 }
  0x6f   : > { %s1588_s25 = sand.u32 (!%p2074_p3), 1, %s1316_s19   ;;  %p2075_p2 = scmp.ne.s32.totalorder (!%p2074_p3), %s2060_s30, 0 }
  0x70   : > { %291 = sbr.rel (%p2074_p3) target bundleno = 605 (0x25d), region = 32  ;;  %s957_s27 = sshll.u32 (!%p2074_p3), %s1588_s25, 4 }
  0x71   : > { %s294_s14 = scalar_lea.sflag (!%p2074_p3), [#allocation6], %s1588_s25  ;;  %s297_s26 = scalar_lea.vmem (!%p2074_p3), [#allocation5], %s957_s27 }
  0x77   : > { %1295 = dma.done.wait (%p2075_p2), %s294_s14, 256  }
  0x78   : > { %1297 = vsyncadd (%p2075_p2), %s294_s14, 4294967040  ;;  %s302_s12 = sand.u32 1, %s1408_s24   ;;  %s306_s9 = scalar_lea.vmem [#allocation8], %s957_s27 }
  0x79   : > { %s303_s28 = scalar_lea.sflag [#allocation9], %s302_s12 }
  0x7a   : > { %1299 = dma.done.wait (%p2075_p2), %s303_s28, 512  }
  0x7b   : > { %1301 = vsyncadd (%p2075_p2), %s303_s28, 4294966784  ;;  %v1603_v0 = vld [vmem:[%s297_s26] sm:$0xff]  ;;  %s1339_s17 = smov 16   ;;  %v1609_v2 = vld [vmem:[%s297_s26 + $0x8] sm:$0xff]  ;;  %s315_s7 = scalar_lea.vmem [#allocation10], %s957_s27  ;;  %vm396_vm0 = vcmask 1047680   ;;  %v376_v37 = vlaneseq }
  0x7c   : > { %v1605_v1 = vld [vmem:[%s306_s9] sm:$0xff]  ;;  %397 = vrot.lane.b32.xlu0 %v1603_v0, %s1339_s17  ;;  %v1611_v3 = vld [vmem:[%s306_s9 + $0x8] sm:$0xff]  ;;  %s1340_s30 = smov 113   ;;  %v1341_v28 = vmov 0   ;;  %vm366_vm3 = vcmask 122880   ;;  %s1646_s8 = scalar_lea.vmem [#allocation11], %s1588_s25 }
  0x7d   : > { %423 = vrot.lane.b32.xlu1 %v1605_v1, %s1339_s17  ;;  %v1615_v4 = vld [vmem:[%s315_s7] sm:$0xff]  ;;  %v1617_v5 = vld [vmem:[%s315_s7 + $0x8] sm:$0xff]  ;;  %v1342_v33 = vmov 0.0   ;;  %vm713_vm4 = vcmask 130055   ;;  %s1655_s13 = scalar_lea.vmem [#allocation14], %s1588_s25  ;;  %s1661_s11 = scalar_lea.vmem [#allocation12], %s1588_s25 }
  0x7e   : > { %367 = vst.msk [vmem:[%s1646_s8] sm:$0x1] %vm366_vm3, %v1342_v33  ;;  %v960_v34 = vld [vmem:[#allocation2] ss:$0 sm:$0xff]  ;;  %v961_v35 = vld [vmem:[#allocation3] ss:$0 sm:$0xff] }
  0x7f   : > { %v962_v36 = vld [vmem:[#allocation4] ss:$0 sm:$0xff]  ;;  %714 = vst.msk [vmem:[#allocation2 - $0x7] sm:$0x80] %vm713_vm4, %v1609_v2  ;;  %715 = vst.msk [vmem:[#allocation3 - $0x7] sm:$0x80] %vm713_vm4, %v1611_v3 }
  0x80   : > { %400 = vrot.lane.b32.xlu0 %v1609_v2, %s1339_s17  ;;  %716 = vst.msk [vmem:[#allocation4 - $0x7] sm:$0x80] %vm713_vm4, %v1617_v5  ;;  %v377_v38 = vshrl.u32 %v376_v37, 7  ;;  %v410_v39 = vrot.slane %v1609_v2, 7  ;;  %v409_v40 = vrot.slane %v1603_v0, 7  ;;  %v435_v41 = vrot.slane %v1605_v1, 7 }
  0x81   : > { %426 = vrot.lane.b32.xlu1 %v1611_v3, %s1339_s17  ;;  %369 = vst.msk [vmem:[%s1655_s13] sm:$0x1] %vm366_vm3, %v1342_v33  ;;  %368 = vst.msk [vmem:[%s1661_s11] sm:$0x1] %vm366_vm3, %v1342_v33  ;;  %v436_v42 = vrot.slane %v1611_v3, 7  ;;  %v380_v48 = vand.u32 127, %v376_v37 }
  0x82   : > { %vm411_vm5 = vcmp.lt.s32.totalorder %v377_v38, 1  ;;  %vm394_vm6 = vcmp.eq.s32.totalorder %v377_v38, 0  ;;  %v460_v50 = vrot.slane %v1615_v4, 7  ;;  %v461_v51 = vrot.slane %v1617_v5, 7  ;;  %s1846_s29 = sshll.u32 %s1324_s21, 4  ;;  %s738_s16 = sshll.u32 %s1646_s8, 4  ;;  %s1867_s16 = int_to_ptr.vmem [resolvable:$true] %s738_s16 }
  0x83   : > { %v413_v43 = vsel %vm411_vm5, %v410_v39, %v409_v40  ;;  %v438_v44 = vsel %vm411_vm5, %v436_v42, %v435_v41  ;;  %v412_v53 = vsel %vm411_vm5, %v409_v40, %v410_v39  ;;  %v437_v55 = vsel %vm411_vm5, %v435_v41, %v436_v42  ;;  %s1865_s1 = scalar_lea.hbm %s2039_s3, %s1846_s29  ;;  %s718_s22 = scalar_lea.sflag [#allocation7], %s1588_s25 }
  0x84   : > { %448 = vrot.lane.b32.xlu0 %v1615_v4, %s1339_s17  ;;  %v421_v45 = vsel %vm394_vm6, %v960_v34, %v413_v43  ;;  %v446_v46 = vsel %vm394_vm6, %v961_v35, %v438_v44  ;;  %vm385_vm7 = vcmp.ge.s32.totalorder %v377_v38, 1  ;;  %vm391_vm8 = vcmp.ge.s32.totalorder %v380_v48, 1  ;;  %s1186_s10 = scalar_lea.vmem %s1867_s16, 16  ;;  %p2092_p7 = scmp.ne.s32.totalorder %s2061_s6, 0 }
  0x85   : > { %451 = vrot.lane.b32.xlu1 %v1617_v5, %s1339_s17  ;;  %v483_v47 = vsub.f32 %v1603_v0, %v421_v45  ;;  %v1680_v54 = vsub.f32 %v1605_v1, %v446_v46  ;;  %v484_v60 = vsub.f32 %v1609_v2, %v412_v53  ;;  %v1685_v62 = vsub.f32 %v1611_v3, %v437_v55  ;;  %vm1693_vm9 = vmand %vm385_vm7, %vm391_vm8  ;;  %p1187_p13 = scmp.ne.s32.totalorder %s1867_s16, %s1186_s10  ;;  %s1344_s15 = smov [#allocation11]  }
  0x86   : > { %v463_v63 = vsel %vm411_vm5, %v461_v51, %v460_v50  ;;  %vm641_vm10 = vcmp.gt.f32.partialorder %v1615_v4, 0.5  ;;  %vm642_vm11 = vcmp.gt.f32.partialorder %v1617_v5, 0.5  ;;  %vm2054_vm7 = vcmask 130048   ;;  %s1190_s27 = sshll.u32 %s1344_s15, 4  ;;  %s1191_s27 = int_to_ptr.vmem [resolvable:$false] %s1190_s27 }
  0x87   : > { %v499_v56 = vmul.f32 %v483_v47, %v483_v47  ;;  %vm643_vm12 = vmand %vm1693_vm9, %vm641_vm10  ;;  %vm1343_vm10 = vmmov 1   ;;  %p1188_p8 = pnand %p1187_p13, %p2092_p7  ;;  %s1192_s14 = scalar_lea.vmem %s1191_s27, 32 }
  0x88   : > { %vm644_vm15 = vmand %vm391_vm8, %vm642_vm11  ;;  %p1193_p0 = scmp.lt.s32.totalorder %s1867_s16, %s1191_s27  ;;  %p1194_p1 = scmp.lt.s32.totalorder %s1192_s14, %s1186_s10 }
  0x89   : > { %p1189_p9 = pneg %p1188_p8 }
  0x8a   : > { %p1195_p10 = por %p1194_p1, %p1193_p0 }
  0x8c   : > { %p1196_p12 = pnand %p1195_p10, %p1189_p9 }
  0xee   : > { %v398_v6 = vpop.permute.xlu0 %397 }
  0xef   : > { %v424_v7 = vpop.permute.xlu1 %423  ;;  %v399_v8 = vsel %vm396_vm0, %v398_v6, %v1603_v0  ;;  %v505_v6 = vmul.f32 %v1680_v54, %v1680_v54 }
  0xf0   : > { %403 = vrot.lane.b32.xlu0 %v399_v8, %s1339_s17  ;;  %v425_v9 = vsel %vm396_vm0, %v424_v7, %v1605_v1 }
  0xf2   : > { %v401_v10 = vpop.permute.xlu0 %400 }
  0xf3   : > { %v427_v11 = vpop.permute.xlu1 %426  ;;  %v402_v12 = vsel %vm396_vm0, %v401_v10, %v1609_v2 }
  0xf4   : > { %429 = vrot.lane.b32.xlu0 %v425_v9, %s1339_s17  ;;  %405 = vrot.lane.b32.xlu1 %v402_v12, %s1339_s17  ;;  %v428_v13 = vsel %vm396_vm0, %v427_v11, %v1611_v3  ;;  %v471_v12 = vsel %vm394_vm6, %v962_v36, %v463_v63 }
  0xf5   : > { %vm657_vm13 = vcmp.gt.f32.partialorder %v471_v12, 0.5 }
  0xf6   : > { %v449_v14 = vpop.permute.xlu0 %448 }
  0xf7   : > { %v452_v15 = vpop.permute.xlu1 %451  ;;  %v450_v16 = vsel %vm396_vm0, %v449_v14, %v1615_v4  ;;  %v500_v14 = vmul.f32 %v484_v60, %v484_v60 }
  0xf8   : > { %431 = vrot.lane.b32.xlu1 %v428_v13, %s1339_s17  ;;  %454 = vrot.lane.b32.xlu0 %v450_v16, %s1339_s17  ;;  %v453_v17 = vsel %vm396_vm0, %v452_v15, %v1617_v5 }
  0xfc   : > { %456 = vrot.lane.b32.xlu1 %v453_v17, %s1339_s17 }
 0x162   : > { %v404_v18 = vpop.permute.xlu0 %403 }
 0x163   : > { %v407_v19 = vsel %vm396_vm0, %v404_v18, %v1603_v0  ;;  %v462_v18 = vsel %vm411_vm5, %v460_v50, %v461_v51 }
 0x164   : > { %475 = vrot.lane.b32.xlu0 %v407_v19, %s1340_s30 }
 0x166   : > { %v406_v20 = vpop.permute.xlu1 %405  ;;  %v430_v21 = vpop.permute.xlu0 %429 }
 0x167   : > { %v408_v22 = vsel %vm396_vm0, %v406_v20, %v1609_v2  ;;  %v433_v23 = vsel %vm396_vm0, %v430_v21, %v1605_v1 }
 0x168   : > { %477 = vrot.lane.b32.xlu1 %v408_v22, %s1340_s30  ;;  %487 = vrot.lane.b32.xlu0 %v433_v23, %s1340_s30 }
 0x16a   : > { %v432_v24 = vpop.permute.xlu1 %431  ;;  %v455_v25 = vpop.permute.xlu0 %454 }
 0x16b   : > { %v458_v26 = vsel %vm396_vm0, %v455_v25, %v1615_v4  ;;  %v434_v27 = vsel %vm396_vm0, %v432_v24, %v1611_v3 }
 0x16c   : > { %vm645_vm1 = vcmp.gt.f32.partialorder %v458_v26, 0.5  ;;  %489 = vrot.lane.b32.xlu1 %v434_v27, %s1340_s30 }
 0x16d   : > { %v647_v29 = vsel %vm645_vm1, 1, %v1341_v28 }
 0x16e   : > { %v457_v30 = vpop.permute.xlu1 %456  ;;  %649 = vrot.lane.b32.xlu0 %v647_v29, %s1340_s30 }
 0x16f   : > { %v459_v31 = vsel %vm396_vm0, %v457_v30, %v1617_v5 }
 0x170   : > { %vm646_vm2 = vcmp.gt.f32.partialorder %v459_v31, 0.5 }
 0x171   : > { %v648_v32 = vsel %vm646_vm2, 1, %v1341_v28  ;;  %vm658_vm2 = vcmp.gt.f32.partialorder %v462_v18, 0.5 }
 0x172   : > { %651 = vrot.lane.b32.xlu1 %v648_v32, %s1340_s30 }
 0x1d6   : > { %v476_v49 = vpop.permute.xlu0 %475 }
 0x1d7   : > { %v481_v52 = vsub.f32 %v1603_v0, %v476_v49 }
 0x1d9   : > { %v509_v57 = vadd.f32 1e-10, %v481_v52  ;;  %v497_v58 = vmul.f32 %v481_v52, %v481_v52 }
 0x1da   : > { %v478_v59 = vpop.permute.xlu1 %477  ;;  %v488_v61 = vpop.permute.xlu0 %487 }
 0x1db   : > { %1072 = vrcp.f32 %v509_v57  ;;  %v482_v0 = vsub.f32 %v1609_v2, %v478_v59  ;;  %v493_v7 = vsub.f32 %v1605_v1, %v488_v61  ;;  %v501_v13 = vadd.f32 %v499_v56, %v497_v58 }
 0x1dc   : > { %v506_v2 = vmul.f32 %v1685_v62, %v1685_v62 }
 0x1dd   : > { %v510_v9 = vadd.f32 1e-10, %v482_v0  ;;  %v503_v10 = vmul.f32 %v493_v7, %v493_v7  ;;  %v575_v11 = vadd.f32 1e-10, %v493_v7  ;;  %v498_v1 = vmul.f32 %v482_v0, %v482_v0 }
 0x1de   : > { %v490_v15 = vpop.permute.xlu1 %489 }
 0x1df   : > { %1074 = vrcp.f32 %v510_v9  ;;  %v507_v16 = vadd.f32 %v505_v6, %v503_v10  ;;  %v494_v17 = vsub.f32 %v1611_v3, %v490_v15  ;;  %v502_v5 = vadd.f32 %v500_v14, %v498_v1 }
 0x1e0   : > { %1076 = vrcp.f32 %v575_v11  ;;  %v650_v4 = vpop.permute.xlu0 %649 }
 0x1e1   : > { %v504_v19 = vmul.f32 %v494_v17, %v494_v17  ;;  %v576_v20 = vadd.f32 1e-10, %v494_v17  ;;  %vm653_vm14 = vcmp.ne.s32.totalorder %v650_v4, 0  ;;  %v661_v21 = vsub.f32 %v501_v13, %v507_v16 }
 0x1e2   : > { %vm655_vm0 = vmand %vm643_vm12, %vm653_vm14 }
 0x1e3   : > { %v508_v22 = vadd.f32 %v506_v2, %v504_v19  ;;  %1078 = vrcp.f32 %v576_v20  ;;  %vm1707_vm1 = vmand %vm655_vm0, %vm657_vm13  ;;  %v663_v23 = vand.u32 2147483647, %v661_v21 }
 0x1e4   : > { %v652_v24 = vpop.permute.xlu1 %651 }
 0x1e5   : > { %v1073_v25 = vpop.eup %1072  ;;  %v665_v26 = vsel %vm1707_vm1, %v663_v23, 0.0  ;;  %vm654_vm4 = vcmp.ne.s32.totalorder %v652_v24, 0  ;;  %v662_v27 = vsub.f32 %v502_v5, %v508_v22 }
 0x1e6   : > { %v1713_v28 = vmul.f32 %v1073_v25, %v483_v47  ;;  %vm656_vm5 = vmand %vm644_vm15, %vm654_vm4  ;;  %v673_v47 = vsel %vm1707_vm1, 1.0, %v1342_v33  ;;  %v677_v48 = vsel %vm2054_vm7, %v665_v26, 0.0 }
 0x1e7   : > { %vm1715_vm6 = vmand %vm656_vm5, %vm658_vm2  ;;  %v664_v30 = vand.u32 2147483647, %v662_v27  ;;  %v702_v55 = vsel %vm2054_vm7, %v673_v47, 0.0 }
 0x1e8   : > { %v1720_v31 = vand.u32 2147483647, %v1713_v28  ;;  %v674_v49 = vsel %vm1715_vm6, 1.0, %v1342_v33 }
 0x1e9   : > { %v1075_v32 = vpop.eup %1074  ;;  %v666_v37 = vsel %vm1715_vm6, %v664_v30, 0.0  ;;  %v703_v56 = vsel %vm2054_vm7, %v674_v49, 0.0 }
 0x1ea   : > { %v1077_v34 = vpop.eup %1076  ;;  %v533_v35 = vadd.f32 1.0, %v1720_v31  ;;  %v1723_v36 = vmul.f32 %v1075_v32, %v484_v60  ;;  %v525_v39 = vmax.f32 %v1720_v31, 1e-30  ;;  %v678_v43 = vsel %vm2054_vm7, %v666_v37, 0.0 }
 0x1eb   : > { %v1728_v38 = vmul.f32 %v1077_v34, %v1680_v54  ;;  %v679_v52 = vadd.f32 %v678_v43, %v677_v48  ;;  %vm517_vm8 = vcmp.gt.f32.partialorder %v1720_v31, 2.4142137  ;;  %vm519_vm9 = vcmp.gt.f32.partialorder %v1720_v31, 0.41421357 }
 0x1ec   : > { %1080 = vrcp.f32 %v533_v35  ;;  %v1732_v40 = vand.u32 2147483647, %v1723_v36  ;;  %vm521_vm11 = vmxor %vm517_vm8, %vm1343_vm10  ;;  %v963_v59 = vadd.f32 -1.0, %v1720_v31  ;;  %v704_v60 = vadd.f32 %v703_v56, %v702_v55 }
 0x1ed   : > { %v1079_v41 = vpop.eup %1078  ;;  %v1735_v42 = vand.u32 2147483647, %v1728_v38  ;;  %1082 = vrcp.f32 %v525_v39  ;;  %v680_v58 = vrot.slane %v679_v52, 4  ;;  %vm1767_vm14 = vmand %vm519_vm9, %vm521_vm11 }
 0x1ee   : > { %v534_v44 = vadd.f32 1.0, %v1732_v40  ;;  %v1740_v45 = vmul.f32 %v1079_v41, %v1685_v62  ;;  %v526_v53 = vmax.f32 %v1732_v40, 1e-30  ;;  %vm518_vm13 = vcmp.gt.f32.partialorder %v1732_v40, 2.4142137 }
 0x1ef   : > { %v599_v46 = vadd.f32 1.0, %v1735_v42  ;;  %v591_v51 = vmax.f32 %v1735_v42, 1e-30  ;;  %vm583_vm12 = vcmp.gt.f32.partialorder %v1735_v42, 2.4142137  ;;  %v681_v62 = vadd.f32 %v680_v58, %v679_v52  ;;  %vm1782_vm4 = vmxor %vm518_vm13, %vm1343_vm10 }
 0x1f0   : > { %1084 = vrcp.f32 %v534_v44  ;;  %v1751_v50 = vand.u32 2147483647, %v1740_v45  ;;  %v705_v7 = vrot.slane %v704_v60, 4  ;;  %vm585_vm15 = vcmp.gt.f32.partialorder %v1735_v42, 0.41421357  ;;  %vm587_vm0 = vmxor %vm583_vm12, %vm1343_vm10 }
 0x1f1   : > { %1086 = vrcp.f32 %v599_v46  ;;  %v682_v9 = vrot.slane %v681_v62, 2  ;;  %vm520_vm2 = vcmp.gt.f32.partialorder %v1732_v40, 0.41421357  ;;  %v964_v12 = vadd.f32 -1.0, %v1732_v40  ;;  %vm1795_vm9 = vmand %vm585_vm15, %vm587_vm0 }
 0x1f2   : > { %v600_v54 = vadd.f32 1.0, %v1751_v50  ;;  %1088 = vrcp.f32 %v591_v51  ;;  %v592_v57 = vmax.f32 %v1751_v50, 1e-30  ;;  %v706_v13 = vadd.f32 %v705_v7, %v704_v60  ;;  %vm1806_vm7 = vmand %vm520_vm2, %vm1782_vm4 }
 0x1f3   : > { %1090 = vrcp.f32 %v526_v53  ;;  %v969_v2 = vadd.f32 -1.0, %v1735_v42  ;;  %vm584_vm5 = vcmp.gt.f32.partialorder %v1751_v50, 2.4142137  ;;  %v683_v1 = vadd.f32 %v682_v9, %v681_v62 }
 0x1f4   : > { %1092 = vrcp.f32 %v600_v54  ;;  %v707_v19 = vrot.slane %v706_v13, 2  ;;  %vm586_vm11 = vcmp.gt.f32.partialorder %v1751_v50, 0.41421357  ;;  %vm588_vm15 = vmxor %vm584_vm5, %vm1343_vm10  ;;  %v970_v26 = vadd.f32 -1.0, %v1751_v50  ;;  %v675_v54 = vld [vmem:[%s1646_s8] sm:$0x1] }
 0x1f5   : > { %1094 = vrcp.f32 %v592_v57  ;;  %v684_v22 = vrot.slane %v683_v1, 1  ;;  %vm1830_vm10 = vmand %vm586_vm11, %vm588_vm15  ;;  %v543_v7 = vsel %vm1767_vm14, 0.7853982, %v1342_v33 }
 0x1f6   : > { %v1081_v61 = vpop.eup %1080  ;;  %v708_v35 = vadd.f32 %v707_v19, %v706_v13 }
 0x1f7   : > { %v1083_v63 = vpop.eup %1082  ;;  %v536_v6 = vmul.f32 %v1081_v61, %v963_v59  ;;  %v685_v49 = vadd.f32 %v684_v22, %v683_v1  ;;  %v701_v61 = vld [vmem:[%s1655_s13] sm:$0x1] }
 0x1f8   : > { %v528_v8 = vmul.f32 -1.0, %v1083_v63  ;;  %v709_v57 = vrot.slane %v708_v35, 1 }
 0x1f9   : > { %v539_v10 = vsel %vm1767_vm14, %v536_v6, %v1720_v31  ;;  %v686_v6 = vadd.f32 %v685_v49, %v675_v54 }
 0x1fa   : > { %v1085_v14 = vpop.eup %1084  ;;  %v1790_v15 = vsel %vm517_vm8, %v528_v8, %v539_v10  ;;  %v710_v63 = vadd.f32 %v709_v57, %v708_v35 }
 0x1fb   : > { %v1087_v16 = vpop.eup %1086  ;;  %v547_v4 = vmul.f32 %v1790_v15, %v1790_v15  ;;  %v538_v18 = vmul.f32 %v1085_v14, %v964_v12  ;;  %688 = vst.msk [vmem:[%s1646_s8] sm:$0x1] %vm366_vm3, %v686_v6 }
 0x1fc   : > { %v1089_v20 = vpop.eup %1088  ;;  %v602_v21 = vmul.f32 %v1087_v16, %v969_v2  ;;  %v711_v12 = vadd.f32 %v710_v63, %v701_v61 }
 0x1fd   : > { %v1091_v23 = vpop.eup %1090  ;;  %v594_v24 = vmul.f32 -1.0, %v1089_v20  ;;  %v549_v25 = vmul.f32 0.080537446, %v547_v4  ;;  %v540_v27 = vsel %vm1806_vm7, %v538_v18, %v1732_v40  ;;  %v563_v14 = vmul.f32 %v547_v4, %v1790_v15 }
 0x1fe   : > { %v1093_v30 = vpop.eup %1092  ;;  %v605_v32 = vsel %vm1795_vm9, %v602_v21, %v1735_v42  ;;  %v530_v34 = vmul.f32 -1.0, %v1091_v23 }
 0x1ff   : > { %v1095_v37 = vpop.eup %1094  ;;  %v1822_v39 = vsel %vm583_vm12, %v594_v24, %v605_v32  ;;  %v965_v41 = vadd.f32 -0.13877685, %v549_v25  ;;  %v604_v43 = vmul.f32 %v1093_v30, %v970_v26 }
 0x200   : > { %v1826_v44 = vmul.f32 %v1822_v39, %v1822_v39  ;;  %v596_v47 = vmul.f32 -1.0, %v1095_v37  ;;  %v1836_v48 = vsel %vm518_vm13, %v530_v34, %v540_v27 }
 0x201   : > { %v553_v51 = vmul.f32 %v965_v41, %v547_v4  ;;  %v606_v52 = vsel %vm1830_vm10, %v604_v43, %v1751_v50  ;;  %v1843_v53 = vmul.f32 %v1836_v48, %v1836_v48 }
 0x202   : > { %v615_v55 = vmul.f32 0.080537446, %v1826_v44  ;;  %v1853_v56 = vsel %vm584_vm5, %v596_v47, %v606_v52 }
 0x203   : > { %v555_v58 = vadd.f32 0.19977711, %v553_v51  ;;  %v1857_v59 = vmul.f32 %v1853_v56, %v1853_v56  ;;  %v550_v60 = vmul.f32 0.080537446, %v1843_v53 }
 0x204   : > { %v971_v62 = vadd.f32 -0.13877685, %v615_v55 }
 0x205   : > { %v557_v8 = vmul.f32 %v555_v58, %v547_v4  ;;  %v616_v9 = vmul.f32 0.080537446, %v1857_v59  ;;  %v966_v10 = vadd.f32 -0.13877685, %v550_v60 }
 0x206   : > { %v619_v11 = vmul.f32 %v971_v62, %v1826_v44 }
 0x207   : > { %v967_v13 = vadd.f32 -0.3333295, %v557_v8  ;;  %v972_v2 = vadd.f32 -0.13877685, %v616_v9  ;;  %v554_v1 = vmul.f32 %v966_v10, %v1843_v53 }
 0x208   : > { %1199 = shalt.err (!%p1196_p12)
}
 0x209   : > { %s1200_s25 = scalar_lea.hbm %s1865_s1, 16  ;;  %s1204_s9 = scalar_lea.hbm %s2039_s3, 128 }
 0x20a   : > { %p1201_p11 = scmp.ne.s32.totalorder %s1865_s1, %s1200_s25  ;;  %p1205_p6 = scmp.lt.u32.totalorder %s1865_s1, %s2039_s3 }
 0x20b   : > { %p1206_p3 = scmp.lt.u32.totalorder %s1204_s9, %s1200_s25  ;;  %p1208_p13 = scmp.lt.u32.totalorder %s1200_s25, %s1865_s1 }
 0x20c   : > { %p1202_p5 = pnand %p1201_p11, %p2092_p7 }
 0x20d   : > { %p1207_p2 = por %p1206_p3, %p1205_p6 }
 0x20e   : > { %p1203_p4 = pneg %p1202_p5 }
 0x20f   : > { %p1209_p8 = por %p1208_p13, %p1207_p2 }
 0x211   : > { %p1210_p9 = pnand %p1209_p8, %p1203_p4 }
 0x213   : > { %1213 = shalt.err (!%p1210_p9)
}
 0x214   : > { %989 = dma.vmem_to_hbm [thread:$0]  (%p2092_p7), %s1867_s16, 16, %s1865_s1, %s718_s22   ;;  %v621_v0 = vadd.f32 0.19977711, %v619_v11  ;;  %v545_v16 = vsel %vm517_vm8, 1.5707964, %v543_v7  ;;  %v565_v18 = vmul.f32 %v967_v13, %v563_v14  ;;  %v620_v19 = vmul.f32 %v972_v2, %v1857_v59 }
 0x215   : > { %712 = vst.msk [vmem:[%s1655_s13] sm:$0x1] %vm366_vm3, %v711_v12  ;;  %v609_v4 = vsel %vm1795_vm9, 0.7853982, %v1342_v33  ;;  %v556_v20 = vadd.f32 0.19977711, %v554_v1  ;;  %v561_v22 = vadd.f32 %v545_v16, %v1790_v15  ;;  %v629_v26 = vmul.f32 %v1826_v44, %v1822_v39  ;;  %s1950_s18 = scalar_lea.hbm %s2040_s4, %s1846_s29  ;;  %s1958_s10 = scalar_lea.hbm %s2041_s5, %s1846_s29 }
 0x216   : > { %v623_v21 = vmul.f32 %v621_v0, %v1826_v44  ;;  %v622_v23 = vadd.f32 0.19977711, %v620_v19  ;;  %v544_v31 = vsel %vm1806_vm7, 0.7853982, %v1342_v33  ;;  %v611_v25 = vsel %vm583_vm12, 1.5707964, %v609_v4 }
 0x217   : > { %v558_v24 = vmul.f32 %v556_v20, %v1843_v53  ;;  %v567_v27 = vadd.f32 %v565_v18, %v561_v22  ;;  %v610_v30 = vsel %vm1830_vm10, 0.7853982, %v1342_v33  ;;  %v564_v5 = vmul.f32 %v1843_v53, %v1836_v48  ;;  %v689_v8 = vld [vmem:[%s1661_s11] sm:$0x1]  ;;  %s751_s30 = sshll.u32 %s1661_s11, 4  ;;  %s764_s8 = sshll.u32 %s1655_s13, 4  ;;  %s1952_s30 = int_to_ptr.vmem [resolvable:$true] %s751_s30  ;;  %s1960_s8 = int_to_ptr.vmem [resolvable:$true] %s764_s8 }
 0x218   : > { %v973_v17 = vadd.f32 -0.3333295, %v623_v21  ;;  %v624_v15 = vmul.f32 %v622_v23, %v1857_v59  ;;  %v627_v34 = vadd.f32 %v611_v25, %v1822_v39  ;;  %v546_v42 = vsel %vm518_vm13, 1.5707964, %v544_v31  ;;  %s1966_s13 = scalar_lea.sflag [#allocation13], %s302_s12  ;;  %s1214_s15 = scalar_lea.vmem %s1952_s30, 16 }
 0x219   : > { %v968_v32 = vadd.f32 -0.3333295, %v558_v24  ;;  %v630_v41 = vmul.f32 %v1857_v59, %v1853_v56  ;;  %v562_v43 = vadd.f32 %v546_v42, %v1836_v48  ;;  %v571_v46 = vsub.f32 0.0, %v567_v27  ;;  %p1215_p0 = scmp.ne.s32.totalorder %s1952_s30, %s1214_s15  ;;  %s1345_s27 = smov [#allocation12]  }
 0x21a   : > { %v631_v35 = vmul.f32 %v973_v17, %v629_v26  ;;  %v974_v37 = vadd.f32 -0.3333295, %v624_v15  ;;  %v612_v47 = vsel %vm584_vm5, 1.5707964, %v610_v30  ;;  %vm635_vm7 = vcmp.lt.f32.partialorder %v1728_v38, 0.0  ;;  %s1218_s14 = sshll.u32 %s1345_s27, 4  ;;  %s1219_s14 = int_to_ptr.vmem [resolvable:$false] %s1218_s14 }
 0x21b   : > { %v566_v44 = vmul.f32 %v968_v32, %v564_v5  ;;  %v628_v49 = vadd.f32 %v612_v47, %v1853_v56  ;;  %vm569_vm8 = vcmp.lt.f32.partialorder %v1713_v28, 0.0  ;;  %vm636_vm12 = vcmp.lt.f32.partialorder %v1740_v45, 0.0  ;;  %p1216_p1 = pnand %p1215_p0, %p2092_p7  ;;  %s1220_s25 = scalar_lea.vmem %s1219_s14, 32 }
 0x21c   : > { %v633_v33 = vadd.f32 %v631_v35, %v627_v34  ;;  %v632_v51 = vmul.f32 %v974_v37, %v630_v41  ;;  %v573_v55 = vsel %vm569_vm8, %v571_v46, %v567_v27  ;;  %vm570_vm13 = vcmp.lt.f32.partialorder %v1723_v36, 0.0  ;;  %p1221_p12 = scmp.lt.s32.totalorder %s1952_s30, %s1219_s14  ;;  %p1222_p11 = scmp.lt.s32.totalorder %s1220_s25, %s1214_s15 }
 0x21d   : > { %v568_v39 = vadd.f32 %v566_v44, %v562_v43  ;;  %vm2093_vm14 = vcmask 130048   ;;  %p1217_p10 = pneg %p1216_p1 }
 0x21e   : > { %v637_v52 = vsub.f32 0.0, %v633_v33  ;;  %v634_v40 = vadd.f32 %v632_v51, %v628_v49  ;;  %vm2094_vm0 = vmmov %vm2093_vm14  ;;  %p1223_p5 = por %p1222_p11, %p1221_p12 }
 0x21f   : > { %v572_v53 = vsub.f32 0.0, %v568_v39 }
 0x220   : > { %v639_v54 = vsel %vm635_vm7, %v637_v52, %v633_v33  ;;  %v638_v57 = vsub.f32 0.0, %v634_v40  ;;  %p1224_p4 = pnand %p1223_p5, %p1217_p10 }
 0x221   : > { %v667_v48 = vsub.f32 %v573_v55, %v639_v54  ;;  %v574_v58 = vsel %vm570_vm13, %v572_v53, %v568_v39 }
 0x222   : > { %v640_v56 = vsel %vm636_vm12, %v638_v57, %v634_v40 }
 0x223   : > { %v669_v50 = vand.u32 2147483647, %v667_v48  ;;  %v668_v59 = vsub.f32 %v574_v58, %v640_v56 }
 0x225   : > { %v671_v28 = vsel %vm1707_vm1, %v669_v50, 0.0  ;;  %v670_v38 = vand.u32 2147483647, %v668_v59 }
 0x226   : > { %v690_v45 = vsel %vm2093_vm14, %v671_v28, 0.0 }
 0x227   : > { %v672_v60 = vsel %vm1715_vm6, %v670_v38, 0.0 }
 0x228   : > { %v691_v36 = vsel %vm2094_vm0, %v672_v60, 0.0 }
 0x229   : > { %v692_v61 = vadd.f32 %v691_v36, %v690_v45 }
 0x22b   : > { %v693_v62 = vrot.slane %v692_v61, 4 }
 0x22d   : > { %v694_v63 = vadd.f32 %v693_v62, %v692_v61 }
 0x22f   : > { %v695_v6 = vrot.slane %v694_v63, 2 }
 0x231   : > { %v696_v7 = vadd.f32 %v695_v6, %v694_v63 }
 0x233   : > { %v697_v3 = vrot.slane %v696_v7, 1 }
 0x235   : > { %v698_v9 = vadd.f32 %v697_v3, %v696_v7 }
 0x237   : > { %v699_v29 = vadd.f32 %v698_v9, %v689_v8 }
 0x239   : > { %700 = vst.msk [vmem:[%s1661_s11] sm:$0x1] %vm366_vm3, %v699_v29 }
 0x23a   : > { %1227 = shalt.err (!%p1224_p4)
}
 0x23b   : > { %s1228_s24 = scalar_lea.hbm %s1950_s18, 16  ;;  %s1232_s29 = scalar_lea.hbm %s2040_s4, 128 }
 0x23c   : > { %p1229_p6 = scmp.ne.s32.totalorder %s1950_s18, %s1228_s24  ;;  %p1233_p13 = scmp.lt.u32.totalorder %s1950_s18, %s2040_s4 }
 0x23d   : > { %p1234_p8 = scmp.lt.u32.totalorder %s1232_s29, %s1228_s24  ;;  %p1236_p0 = scmp.lt.u32.totalorder %s1228_s24, %s1950_s18 }
 0x23e   : > { %p1230_p3 = pnand %p1229_p6, %p2092_p7 }
 0x23f   : > { %p1235_p9 = por %p1234_p8, %p1233_p13 }
 0x240   : > { %p1231_p2 = pneg %p1230_p3 }
 0x241   : > { %p1237_p1 = por %p1236_p0, %p1235_p9 }
 0x243   : > { %p1238_p10 = pnand %p1237_p1, %p1231_p2 }
 0x245   : > { %1241 = shalt.err (!%p1238_p10)
}
 0x246   : > { %990 = dma.vmem_to_hbm [thread:$0]  (%p2092_p7), %s1952_s30, 16, %s1950_s18, %s1966_s13  }
 0x247   : > { %s1242_s9 = scalar_lea.vmem %s1960_s8, 16  ;;  %s1346_s17 = smov [#allocation14]  }
 0x248   : > { %p1243_p12 = scmp.ne.s32.totalorder %s1960_s8, %s1242_s9  ;;  %s1246_s7 = sshll.u32 %s1346_s17, 4  ;;  %s1247_s7 = int_to_ptr.vmem [resolvable:$false] %s1246_s7 }
 0x249   : > { %s1248_s16 = scalar_lea.vmem %s1247_s7, 32  ;;  %p1249_p4 = scmp.lt.s32.totalorder %s1960_s8, %s1247_s7 }
 0x24a   : > { %p1244_p11 = pnand %p1243_p12, %p2092_p7  ;;  %p1250_p6 = scmp.lt.s32.totalorder %s1248_s16, %s1242_s9 }
 0x24c   : > { %p1245_p5 = pneg %p1244_p11  ;;  %p1251_p3 = por %p1250_p6, %p1249_p4 }
 0x24e   : > { %p1252_p2 = pnand %p1251_p3, %p1245_p5 }
 0x250   : > { %1255 = shalt.err (!%p1252_p2)
}
 0x251   : > { %s1256_s30 = scalar_lea.hbm %s1958_s10, 16  ;;  %s1260_s1 = scalar_lea.hbm %s2041_s5, 128 }
 0x252   : > { %p1257_p13 = scmp.ne.s32.totalorder %s1958_s10, %s1256_s30  ;;  %p1261_p0 = scmp.lt.u32.totalorder %s1958_s10, %s2041_s5 }
 0x253   : > { %p1262_p1 = scmp.lt.u32.totalorder %s1260_s1, %s1256_s30  ;;  %p1264_p12 = scmp.lt.u32.totalorder %s1256_s30, %s1958_s10 }
 0x254   : > { %p1258_p8 = pnand %p1257_p13, %p2092_p7 }
 0x255   : > { %p1263_p10 = por %p1262_p1, %p1261_p0 }
 0x256   : > { %p1259_p9 = pneg %p1258_p8 }
 0x257   : > { %p1265_p11 = por %p1264_p12, %p1263_p10 }
 0x259   : > { %p1266_p5 = pnand %p1265_p11, %p1259_p9 }
 0x25b   : > { %1269 = shalt.err (!%p1266_p5)
}
 0x25c   : > { %991 = dma.vmem_to_hbm [thread:$0]  (%p2092_p7), %s1960_s8, 16, %s1958_s10, %s1966_s13  }
 0x25d PF: > { %s2095_s27 = sld [smem:[#allocation19_spill]]  ;;  %s2096_s14 = sld [smem:[#allocation23_spill]] }
 0x25e   : > { %p1016_p4 = scmp.ge.s32.totalorder %s1332_s23, 2 }
 0x263   : > { %s776_s25 = sand.u32 1, %s2095_s27   ;;  %p2097_p6 = scmp.ne.s32.totalorder %s2096_s14, 0 }
 0x264   : > { %s777_s24 = scalar_lea.sflag [#allocation7], %s776_s25 }
 0x265   : > { %p1006_p3 = pnand %p1016_p4, %p2097_p6 }
 0x267   : > { %1303 = dma.done.wait (!%p1006_p3), %s777_s24, 16  }
 0x268   : > { %1305 = vsyncadd (!%p1006_p3), %s777_s24, 4294967280  ;;  %s2098_s12 = sadd.s32 4294967294, %s1332_s23  }
 0x269   : > { %s784_s11 = sand.u32 1, %s2098_s12  }
 0x26a   : > { %s785_s29 = scalar_lea.sflag [#allocation13], %s784_s11 }
 0x26b   : > { %1307 = dma.done.wait (!%p1006_p3), %s785_s29, 32  }
 0x26c   : > { %1309 = vsyncadd (!%p1006_p3), %s785_s29, 4294967264  ;;  %s28_s23 = sadd.s32 1, %s1332_s23   ;;  %s2099_s6 = sld [smem:[#allocation22_spill]] }
 0x26d   : > { %p25_p7 = scmp.ge.s32.totalorder %s28_s23, 10   ;;  %s2100_s21 = sld [smem:[#allocation20_spill]] }
 0x26e   : > { %s2101_s22 = sld [smem:[#allocation21_spill]]  ;;  %s2102_s18 = smov %s1316_s19 }
 0x26f   : > { %s2103_s19 = smov %s1320_s20  ;;  %27 = sbr.rel (!%p25_p7) target bundleno = 12 (0xc), region = 137 }
 0x272   : > { %s2104_s20 = smov %s2099_s6 }
 0x276   :  { %797 = vsyncpa [#allocation6], 1 }
 0x277   :  { %799 = vsyncpa [#allocation6 + $0x1], 1 }
 0x278   :  { %800 = vsyncpa [#allocation9], 1 }
 0x279   :  { %802 = vsyncpa [#allocation9 + $0x1], 1 }
 0x27a   :  { %803 = vsyncpa [#allocation7], 1 }
 0x27b   :  { %805 = vsyncpa [#allocation7 + $0x1], 1 }
 0x27c   :  { %806 = vsyncpa [#allocation13], 1 }
 0x27d   :  { %808 = vsyncpa [#allocation13 + $0x1], 1 }

</bundles_post_ra>
